<compile_context>
chip_gen: v7x
topology: tpu7x:2x2x1
jax: 0.10.0
libtpu: 0.0.40
codegen_flags: <defaults>
</compile_context>

<pallas_src>
import functools

import jax
import jax.numpy as jnp
from jax.experimental import pallas as pl
from jax.experimental.pallas import tpu as pltpu


# ----------------------------------------------------------------------------- kernel
def _softmax_kernel(x_ref, o_ref):
    """Numerically-stable softmax along the last (lane) axis of the block."""
    x = x_ref[...].astype(jnp.float32)
    x_max = jnp.max(x, axis=-1, keepdims=True)
    e = jnp.exp(x - x_max)
    denom = jnp.sum(e, axis=-1, keepdims=True)
    # EUP approximate reciprocal + one Newton-Raphson step (per-row only, so
    # essentially free) to recover near-exact normalization.
    inv = pl.reciprocal(denom, approx=True)
    inv = inv * (2.0 - denom * inv)
    o_ref[...] = (e * inv).astype(o_ref.dtype)


# ----------------------------------------------------------------------------- tiling
# Keep the whole per-step working set (2 in bufs + 2 out bufs + two f32 temps)
# under this budget so it fits v7x's 64 MiB physical VMEM with headroom.
_VMEM_TILE_BUDGET = 40 * 1024 * 1024
_MAX_BLOCK_ROWS = 1024


def _pick_block_rows(rows: int, n: int, itemsize: int):
    # Sublane packing: f32 -> 8, bf16/f16 -> 16, int8/fp8 -> 32 rows per vreg.
    sublane = max(8, 32 // itemsize)
    # Per-row VMEM bytes: 2 double-buffered input + 2 double-buffered output
    # copies (itemsize each) plus two f32 temporaries (x, e) in the body.
    bytes_per_row = n * (4 * itemsize + 2 * 4)

    if sublane * bytes_per_row > _VMEM_TILE_BUDGET:
        # Even the minimum (sublane, N) tile does not fit.
        return 0, sublane, bytes_per_row

    br = _VMEM_TILE_BUDGET // bytes_per_row
    br = min(int(br), _MAX_BLOCK_ROWS, pl.cdiv(rows, sublane) * sublane)
    br = max((br // sublane) * sublane, sublane)
    return int(br), sublane, bytes_per_row


def _softmax_2d(x2d: jax.Array) -> jax.Array:
    rows, n = x2d.shape
    itemsize = jnp.dtype(x2d.dtype).itemsize

    # Small-N fallback: fewer than 128 lanes wastes most of each vreg and
    # forces masked partial stores — the Pallas kernel does not pay off there.
    if rows == 0 or n < 128:
        return jax.nn.softmax(x2d.astype(jnp.float32), axis=-1).astype(x2d.dtype)

    block_rows, _, bytes_per_row = _pick_block_rows(rows, n, itemsize)
    if block_rows == 0:
        # TODO(synk): very large N (a full-width row tile does not fit VMEM even
        # at the minimum sublane height) needs an N-tiled online softmax with
        # (rows, 1) max/sum accumulators on an "arbitrary" reduction axis.
        return jax.nn.softmax(x2d.astype(jnp.float32), axis=-1).astype(x2d.dtype)

    # Raise the scoped-VMEM limit to cover the chosen tile (the 16/32 MiB
    # default would otherwise cap the tile size); stay below v7x's 64 MiB.
    vmem_limit = int(min(56 * 1024 * 1024,
                         max(32 * 1024 * 1024,
                             block_rows * bytes_per_row + 4 * 1024 * 1024)))

    grid = (pl.cdiv(rows, block_rows),)  # ragged last block handled by Pallas
    return pl.pallas_call(
        _softmax_kernel,
        out_shape=jax.ShapeDtypeStruct((rows, n), x2d.dtype),
        grid_spec=pltpu.PrefetchScalarGridSpec(
            num_scalar_prefetch=0,
            grid=grid,
            in_specs=[pl.BlockSpec((block_rows, n), lambda i: (i, 0))],
            out_specs=pl.BlockSpec((block_rows, n), lambda i: (i, 0)),
        ),
        compiler_params=pltpu.CompilerParams(
            dimension_semantics=("parallel",),
            vmem_limit_bytes=vmem_limit,
        ),
    )(x2d)


# ----------------------------------------------------------------------------- wrapper
@functools.partial(jax.jit, static_argnames=("dim",))
def softmax(x: jax.Array, dim=None) -> jax.Array:
    """Equivalent of Softmax(dim).forward(x) from the PyTorch module."""
    if dim is None:
        dim = -1
    dim = dim % x.ndim
    last = x.ndim - 1

    if dim != last:
        # TODO(synk): for hot non-last-axis callers, fold trailing dims into
        # the row axis instead of paying two physical HBM transpose passes.
        xm = jnp.moveaxis(x, dim, -1)
    else:
        xm = x

    n = xm.shape[-1]
    lead_shape = xm.shape[:-1]
    x2d = xm.reshape((-1, n))

    out2d = _softmax_2d(x2d)

    out = out2d.reshape(lead_shape + (n,))
    if dim != last:
        out = jnp.moveaxis(out, -1, dim)
    return out


# ----------------------------------------------------------------------------- demo
if __name__ == "__main__":
    k0, k1, k2 = jax.random.split(jax.random.PRNGKey(0), 3)

    # 1) Exercises the Pallas kernel: batch=2, seq=8, hidden=256 (lane-dense).
    x = jax.random.normal(k0, (2, 8, 256), dtype=jnp.float32)
    y = jax.block_until_ready(softmax(x))                 # dim=None -> last axis
    ref = jax.nn.softmax(x, axis=-1)
    assert jnp.allclose(y, ref, atol=1e-5, rtol=1e-5), "f32 last-axis mismatch"

    # 2) Non-last softmax axis + small-N fallback path (N=7 < 128 lanes).
    x2 = jax.random.normal(k1, (4, 128, 7), dtype=jnp.float32)
    y2 = jax.block_until_ready(softmax(x2, dim=1))
    ref2 = jax.nn.softmax(x2, axis=1)
    assert jnp.allclose(y2, ref2, atol=1e-5, rtol=1e-5), "dim=1 mismatch"

    # 3) bf16 path (sublane=16 tile alignment, ragged row count over the grid).
    x3 = jax.random.normal(k2, (2, 300, 128), dtype=jnp.bfloat16)
    y3 = jax.block_until_ready(softmax(x3))
    ref3 = jax.nn.softmax(x3.astype(jnp.float32), axis=-1)
    assert jnp.allclose(y3.astype(jnp.float32), ref3, atol=1e-2, rtol=1e-2), \
        "bf16 mismatch"

    # 4) The literal example from the PyTorch file (small-N fallback path).
    x_small = jnp.array([[1.0, 2.0, 3.0], [4.0, 5.0, 6.0]], dtype=jnp.float32)
    y_small = jax.block_until_ready(softmax(x_small))
    ref_small = jax.nn.softmax(x_small, axis=-1)
    assert jnp.allclose(y_small, ref_small, atol=1e-6, rtol=1e-6), "demo mismatch"

    print("KERNEL_OK")
</pallas_src>

<mosaic_0001>
module attributes {stable_mosaic.version = 11 : i64} {
  func.func @_softmax_kernel(%arg0: i32, %arg1: memref<16x256xf32, #tpu.memory_space<vmem>>, %arg2: memref<16x256xf32, #tpu.memory_space<vmem>>) attributes {dimension_semantics = [#tpu.dimension_semantics<parallel>], iteration_bounds = array<i64: 1>, scalar_prefetch = 0 : i64, scratch_operands = 0 : i64, tpu.core_type = #tpu.core_type<tc>, window_params = [{transform_indices = @transform_0, window_bounds = array<i64: 16, 256>}, {transform_indices = @transform_1, window_bounds = array<i64: 16, 256>}]} {
    %c0 = arith.constant 0 : index
    %c0_0 = arith.constant 0 : index
    %0 = vector.load %arg1[%c0, %c0_0] : memref<16x256xf32, #tpu.memory_space<vmem>>, vector<16x256xf32>
    %cst = arith.constant dense<0xFF800000> : vector<16xf32>
    %1 = vector.multi_reduction <maximumf>, %0, %cst [1] : vector<16x256xf32> to vector<16xf32>
    %2 = vector.shape_cast %1 : vector<16xf32> to vector<16x1xf32>
    %3 = vector.broadcast %2 : vector<16x1xf32> to vector<16x256xf32>
    %4 = arith.subf %0, %3 : vector<16x256xf32>
    %5 = math.exp %4 : vector<16x256xf32>
    %cst_1 = arith.constant dense<0.000000e+00> : vector<16xf32>
    %6 = vector.multi_reduction <add>, %5, %cst_1 [1] : vector<16x256xf32> to vector<16xf32>
    %7 = vector.shape_cast %6 : vector<16xf32> to vector<16x1xf32>
    %8 = tpu.reciprocal %7 {approx = true} : vector<16x1xf32> -> vector<16x1xf32>
    %9 = arith.mulf %7, %8 : vector<16x1xf32>
    %cst_2 = arith.constant 2.000000e+00 : f32
    %10 = vector.broadcast %cst_2 : f32 to vector<16x1xf32>
    %11 = arith.subf %10, %9 : vector<16x1xf32>
    %12 = arith.mulf %8, %11 : vector<16x1xf32>
    %13 = vector.broadcast %12 : vector<16x1xf32> to vector<16x256xf32>
    %14 = arith.mulf %5, %13 : vector<16x256xf32>
    %c0_3 = arith.constant 0 : index
    %c0_4 = arith.constant 0 : index
    %15 = vector.load %arg2[%c0_3, %c0_4] : memref<16x256xf32, #tpu.memory_space<vmem>>, vector<16x256xf32>
    tpu.vector_store %arg2[%c0_3, %c0_4], %14 {strides = array<i32>} : memref<16x256xf32, #tpu.memory_space<vmem>>, vector<16x256xf32>,
    return
  }
  func.func @transform_0(%arg0: i32) -> (i32, i32) {
    %c0_i32 = arith.constant 0 : i32
    %c0_i32_0 = arith.constant 0 : i32
    return %arg0, %c0_i32 : i32, i32
  }
  func.func @transform_1(%arg0: i32) -> (i32, i32) {
    %c0_i32 = arith.constant 0 : i32
    %c0_i32_0 = arith.constant 0 : i32
    return %arg0, %c0_i32 : i32, i32
  }
}

</mosaic_0001>

<bundles_post_ra>
// kernel: softmax.1
= control target key start
LH: loop header
LB: loop body
LE: loop exit
PB: predicated region body
PF: predicated region fallthrough
CT: control target
= control target key end

     0   :  { %6 = vsyncpa [#allocation3], 0  ;;  %s192_s0 = inlined_call_operand.hbm [shape: f32[16,256], index: 0, kind: input, shape index: {}]   ;;  %s193_s1 = inlined_call_operand.hbm [shape: f32[16,256], index: 1, kind: output, shape index: {}]  }
   0x1   :  { %7 = vsyncpa [#allocation4], 0  ;;  %s148_s6 = smov [#allocation2]   ;;  %s100_s10 = scalar_lea.hbm %s192_s0, 512 }
   0x2   :  { %s13_s7 = sshll.u32 %s148_s6, 4  ;;  %p101_p0 = scmp.ne.s32.totalorder %s192_s0, %s100_s10  ;;  %s14_s7 = int_to_ptr.vmem [resolvable:$true] %s13_s7 }
   0x3   :  { %p104_p1 = scmp.lt.u32.totalorder %s100_s10, %s192_s0 }
   0x5   :  { %p106_p2 = pnand %p104_p1, %p101_p0 }
   0x7   :  { %109 = shalt.err (!%p106_p2)
}
   0x8   :  { %s110_s15 = scalar_lea.vmem %s14_s7, 512  ;;  %p115_p4 = scmp.lt.s32.totalorder %s14_s7, %s14_s7 }
   0x9   :  { %p111_p3 = scmp.ne.s32.totalorder %s14_s7, %s110_s15  ;;  %p116_p5 = scmp.lt.s32.totalorder %s110_s15, %s110_s15 }
   0xb   :  { %p117_p6 = por %p116_p5, %p115_p4 }
   0xd   :  { %p118_p7 = pnand %p117_p6, %p111_p3 }
   0xf   :  { %121 = shalt.err (!%p118_p7)
}
  0x10   :  { %s149_s16 = smov 256   ;;  %s150_s17 = smov 16  }
  0x11   :  { %19 = dma.hbm_to_vmem [thread:$0]  %s192_s0, 512, %s14_s7, [#allocation3], %s149_s16, %s149_s16, %s150_s17  }
  0x12   :  { %144 = dma.done.wait [#allocation3], 512  }
  0x13   :  { %145 = vsyncadd [#allocation3], 4294966784  ;;  %v23_v0 = vld [vmem:[#allocation2] sm:$0xff]  ;;  %v24_v1 = vld [vmem:[#allocation2 + $0x8] sm:$0xff]  ;;  %s151_s0 = smov [#allocation5]  }
  0x14   :  { %v25_v2 = vld [vmem:[#allocation2 + $0x10] sm:$0xff]  ;;  %v27_v3 = vmax.f32 %v23_v0, %v24_v1  ;;  %v26_v4 = vld [vmem:[#allocation2 + $0x18] sm:$0xff]  ;;  %s72_s20 = sshll.u32 %s151_s0, 4  ;;  %s73_s20 = int_to_ptr.vmem [resolvable:$true] %s72_s20 }
  0x15   :  { %v30_v5 = vmax.f32 %v25_v2, %v26_v4  ;;  %s122_s21 = scalar_lea.vmem %s73_s20, 512  ;;  %p127_p9 = scmp.lt.s32.totalorder %s73_s20, %s73_s20 }
  0x16   :  { %28 = vmax.xlane.f32.xlu0 %v27_v3  ;;  %p123_p8 = scmp.ne.s32.totalorder %s73_s20, %s122_s21  ;;  %p128_p10 = scmp.lt.s32.totalorder %s122_s21, %s122_s21 }
  0x18   :  { %p129_p11 = por %p128_p10, %p127_p9 }
  0x1a   :  { %31 = vmax.xlane.f32.xlu0 %v30_v5  ;;  %p130_p12 = pnand %p129_p11, %p123_p8 }
  0xa3   :  { %v29_v6 = vpop.xlane.xlu0 %28 }
  0xa4   :  { %v33_v7 = vsub.f32 %v23_v0, %v29_v6  ;;  %v34_v8 = vsub.f32 %v24_v1, %v29_v6 }
  0xa6   :  { %v37_v9 = vmul.f32 1.442695, %v33_v7  ;;  %v39_v10 = vmul.f32 1.442695, %v34_v8 }
  0xa7   :  { %v32_v11 = vpop.xlane.xlu0 %31 }
  0xa8   :  { %88 = vpow2.f32 %v37_v9  ;;  %v35_v12 = vsub.f32 %v25_v2, %v32_v11  ;;  %v36_v13 = vsub.f32 %v26_v4, %v32_v11 }
  0xa9   :  { %90 = vpow2.f32 %v39_v10 }
  0xaa   :  { %v41_v14 = vmul.f32 1.442695, %v35_v12  ;;  %v43_v15 = vmul.f32 1.442695, %v36_v13 }
  0xac   :  { %92 = vpow2.f32 %v41_v14 }
  0xad   :  { %94 = vpow2.f32 %v43_v15 }
  0xb2   :  { %v89_v16 = vpop.eup %88 }
  0xb3   :  { %v91_v17 = vpop.eup %90 }
  0xb4   :  { %v45_v18 = vadd.f32 %v91_v17, %v89_v16 }
  0xb6   :  { %v93_v19 = vpop.eup %92  ;;  %46 = vadd.xlane.f32.xlu1 %v45_v18 }
  0xb7   :  { %v95_v20 = vpop.eup %94 }
  0xb8   :  { %v48_v21 = vadd.f32 %v95_v20, %v93_v19 }
  0xba   :  { %49 = vadd.xlane.f32.xlu1 %v48_v21 }
 0x143   :  { %v47_v22 = vpop.xlane.xlu1 %46 }
 0x144   :  { %96 = vrcp.f32 %v47_v22 }
 0x147   :  { %v50_v23 = vpop.xlane.xlu1 %49 }
 0x148   :  { %98 = vrcp.f32 %v50_v23 }
 0x14e   :  { %v97_v24 = vpop.eup %96 }
 0x14f   :  { %v53_v25 = vmul.f32 %v97_v24, %v47_v22 }
 0x151   :  { %v55_v26 = vsub.f32 2.0, %v53_v25 }
 0x152   :  { %v99_v27 = vpop.eup %98 }
 0x153   :  { %v57_v28 = vmul.f32 %v97_v24, %v55_v26  ;;  %v54_v29 = vmul.f32 %v99_v27, %v50_v23 }
 0x155   :  { %v59_v30 = vmul.f32 %v89_v16, %v57_v28  ;;  %v60_v31 = vmul.f32 %v91_v17, %v57_v28  ;;  %v56_v32 = vsub.f32 2.0, %v54_v29 }
 0x157   :  { %63 = vst [vmem:[#allocation5] sm:$0xff] %v59_v30  ;;  %64 = vst [vmem:[#allocation5 + $0x8] sm:$0xff] %v60_v31  ;;  %v58_v33 = vmul.f32 %v99_v27, %v56_v32 }
 0x159   :  { %v61_v34 = vmul.f32 %v93_v19, %v58_v33  ;;  %v62_v35 = vmul.f32 %v95_v20, %v58_v33 }
 0x15b   :  { %65 = vst [vmem:[#allocation5 + $0x10] sm:$0xff] %v61_v34  ;;  %66 = vst [vmem:[#allocation5 + $0x18] sm:$0xff] %v62_v35 }
 0x15c   :  { %133 = shalt.err (!%p130_p12)
}
 0x15d   :  { %s134_s24 = scalar_lea.hbm %s193_s1, 512 }
 0x15e   :  { %p135_p13 = scmp.ne.s32.totalorder %s193_s1, %s134_s24  ;;  %p138_p0 = scmp.lt.u32.totalorder %s134_s24, %s193_s1 }
 0x160   :  { %p140_p1 = pnand %p138_p0, %p135_p13 }
 0x162   :  { %143 = shalt.err (!%p140_p1)
}
 0x163   :  { %78 = dma.vmem_to_hbm [thread:$0]  %s73_s20, 512, %s193_s1, [#allocation4], %s149_s16, %s149_s16, %s150_s17  }
 0x164   :  { %146 = dma.done.wait [#allocation4], 512  }
 0x165   :  { %147 = vsyncadd [#allocation4], 4294966784 }
 0x166   :  { %82 = vsyncpa [#allocation3], 1 }
 0x167   :  { %83 = vsyncpa [#allocation4], 1 }

</bundles_post_ra>
